<compile_context>
chip_gen: v7x
topology: tpu7x:2x2x1
jax: 0.10.0
libtpu: 0.0.40
codegen_flags: <defaults>
</compile_context>

<pallas_src>
import functools
import math

import jax
import jax.numpy as jnp
from jax.experimental import pallas as pl
from jax.experimental.pallas import tpu as pltpu


# ----------------------------------------------------------------------------
# Pallas kernel: attention pooling for B_TILE batch elements per grid step
# ----------------------------------------------------------------------------
def _attn_pool_kernel(tokf_ref, tok0_ref, wq_ref, bq_ref, wkv_ref, bkv_ref,
                      wc_ref, bc_ref, o_ref, *, scale, num_heads, head_dim,
                      b_tile, seq_len, seq_pad):
    C = num_heads * head_dim
    B, Lp = b_tile, seq_pad

    tokf = tokf_ref[...]                                   # (B*Lp, C) bf16 tokens
    tok0 = tok0_ref[...]                                   # (B, C)    bf16 mean tokens

    # ---- packed K/V projection: one (B*Lp, C) @ (C, 2C) MXU matmul, f32 acc ----
    kv = jnp.dot(tokf, wkv_ref[...], preferred_element_type=jnp.float32)
    kv = kv + bkv_ref[...]                                 # (B*Lp, 2C)
    k = kv[:, :C]
    v = kv[:, C:]

    # ---- only the mean-token query is needed (module returns x[0]) ----
    q0 = jnp.dot(tok0, wq_ref[...], preferred_element_type=jnp.float32) + bq_ref[...]
    q0 = q0 * scale                                        # (B, C) f32

    # one-hot head-selection matrix built in-kernel (no DMA'd constant)
    lane = jax.lax.broadcasted_iota(jnp.int32, (num_heads, C), 1)
    head = jax.lax.broadcasted_iota(jnp.int32, (num_heads, C), 0)
    lo = head * head_dim
    sel_f = ((lane >= lo) & (lane < lo + head_dim)).astype(jnp.float32)   # (H, C)

    # per-batch, per-head masked query; bf16 for the small MXU matmuls below
    qsel = (sel_f[None] * q0[:, None, :]).astype(jnp.bfloat16)            # (B, H, C)

    # Lp is a multiple of 8, so these reshapes are sublane-tile aligned.
    k3 = k.reshape(B, Lp, C).astype(jnp.bfloat16)          # (B, Lp, C)
    v3 = v.reshape(B, Lp, C).astype(jnp.bfloat16)          # (B, Lp, C)

    # ---- scores on the MXU, masked softmax over keys (axis=1) in f32 ----
    s = jnp.einsum('blc,bhc->blh', k3, qsel,
                   preferred_element_type=jnp.float32)     # (B, Lp, H)
    key_idx = jax.lax.broadcasted_iota(jnp.int32, (B, Lp, num_heads), 1)
    s = jnp.where(key_idx < seq_len, s, -1e30)             # mask padded keys
    s = s - jnp.max(s, axis=1, keepdims=True)
    p = jnp.exp(s)
    p = p / jnp.sum(p, axis=1, keepdims=True)              # exact divide, tiny denom

    # ---- weighted value reduction on the MXU, then collapse the head axis ----
    a = jnp.einsum('blh,blc->bhc', p.astype(jnp.bfloat16), v3,
                   preferred_element_type=jnp.float32)     # (B, H, C)
    attn = jnp.sum(sel_f[None] * a, axis=1)                # (B, C)

    # output projection (c_proj)
    out = jnp.dot(attn.astype(jnp.bfloat16), wc_ref[...],
                  preferred_element_type=jnp.float32) + bc_ref[...]
    o_ref[...] = out.astype(o_ref.dtype)                   # (B, Dout) dense store


# ----------------------------------------------------------------------------
# One-time deterministic probe: does this jax build accept Buffered(1)?
# ----------------------------------------------------------------------------
@functools.lru_cache(maxsize=None)
def _single_buffer_supported():
    if not hasattr(pl, "Buffered"):
        return False
    try:
        def _k(a_ref, o_ref):
            o_ref[...] = a_ref[...]
        x = jnp.zeros((8, 128), jnp.float32)
        pl.pallas_call(
            _k,
            out_shape=jax.ShapeDtypeStruct((8, 128), jnp.float32),
            grid=(2,),
            in_specs=[pl.BlockSpec((8, 128), lambda i: (0, 0),
                                   pipeline_mode=pl.Buffered(1))],
            out_specs=pl.BlockSpec((8, 128), lambda i: (0, 0)),
        )(x)
        return True
    except Exception:
        return False


def _vmem_limit_bytes():
    # v7x: 64 MiB/TC, v5e/v6e: 128 MiB.  Leave Mosaic internal-scratch headroom.
    cap = 64 * 1024 * 1024
    try:
        cap = int(pltpu.get_tpu_info().vmem_capacity_bytes)
    except Exception:
        pass
    return int(min(cap - 8 * 1024 * 1024, 96 * 1024 * 1024))


# ----------------------------------------------------------------------------
# Wrapper
# ----------------------------------------------------------------------------
def attention_pool2d_pallas(x, params, num_heads, *, b_tile=8):
    """x: (N, C, H, W) -> (N, output_dim), matching AttentionPool2d.forward."""
    N, C, Hs, Ws = x.shape
    assert C % num_heads == 0
    hd = C // num_heads
    HW = Hs * Ws
    L = HW + 1
    Lp = ((L + 7) // 8) * 8          # key padding -> tile-aligned in-kernel reshapes
    Dout = params['w_c'].shape[1]

    # ---- token formation (layout plumbing, fused by XLA) ----
    xs = jnp.transpose(x.reshape(N, C, HW), (0, 2, 1)).astype(jnp.float32)   # (N, HW, C)
    tok = jnp.concatenate([jnp.mean(xs, axis=1, keepdims=True), xs], axis=1)
    tok = tok + params['pos'][None].astype(jnp.float32)                      # (N, L, C)
    tok = tok.astype(jnp.bfloat16)   # bf16 DMA stream (kernel feeds bf16 to the MXU)

    # ---- batch tiling: B_TILE elements per grid step fill the MXU M-rows ----
    # TODO(synk): B_TILE could be keyed per generation (larger on v6e's 128 MiB VMEM).
    B = int(max(1, min(b_tile, N)))
    Npad = -(-N // B) * B
    tok = jnp.pad(tok, ((0, Npad - N), (0, Lp - L), (0, 0)))  # zero-pad batch & keys
    tok_flat = tok.reshape(Npad * Lp, C)                      # (Npad*Lp, C) bf16
    tok0 = tok[:, 0, :]                                       # (Npad, C) mean tokens

    # ---- weights: bf16, K/V packed into one (C, 2C) matrix; f32 biases ----
    wq = params['w_q'].astype(jnp.bfloat16)
    bq = params['b_q'].astype(jnp.float32)
    wkv = jnp.concatenate([params['w_k'], params['w_v']], axis=1).astype(jnp.bfloat16)
    bkv = jnp.concatenate([params['b_k'], params['b_v']], axis=1).astype(jnp.float32)
    wc = params['w_c'].astype(jnp.bfloat16)
    bc = params['b_c'].astype(jnp.float32)
    consts = [wq, bq, wkv, bkv, wc, bc]

    kernel = functools.partial(
        _attn_pool_kernel, scale=1.0 / math.sqrt(hd), num_heads=num_heads,
        head_dim=hd, b_tile=B, seq_len=L, seq_pad=Lp)

    single = _single_buffer_supported()

    def const_spec(arr):
        nd = arr.ndim
        idx = lambda i, _nd=nd: (0,) * _nd
        if single:
            # grid-invariant operands: one resident buffer (28 MiB, not 57 MiB,
            # at real CLIP widths — the key to fitting v7x's 64 MiB VMEM).
            return pl.BlockSpec(arr.shape, idx, pipeline_mode=pl.Buffered(1))
        return pl.BlockSpec(arr.shape, idx)

    in_specs = ([pl.BlockSpec((B * Lp, C), lambda i: (i, 0)),
                 pl.BlockSpec((B, C), lambda i: (i, 0))]
                + [const_spec(a) for a in consts])

    out = pl.pallas_call(
        kernel,
        out_shape=jax.ShapeDtypeStruct((Npad, Dout), jnp.float32),
        grid_spec=pltpu.PrefetchScalarGridSpec(
            num_scalar_prefetch=0,
            grid=(Npad // B,),
            in_specs=in_specs,
            out_specs=pl.BlockSpec((B, Dout), lambda i: (i, 0)),
        ),
        compiler_params=pltpu.CompilerParams(
            dimension_semantics=("parallel",),
            vmem_limit_bytes=_vmem_limit_bytes(),
        ),
    )(tok_flat, tok0, *consts)
    return out[:N]


# ----------------------------------------------------------------------------
# Pure-JAX reference (full multi-head attention over all queries, then x[0])
# ----------------------------------------------------------------------------
def attention_pool2d_ref(x, params, num_heads):
    N, C, Hs, Ws = x.shape
    HW = Hs * Ws
    L = HW + 1
    hd = C // num_heads
    xs = jnp.transpose(x.reshape(N, C, HW), (0, 2, 1)).astype(jnp.float32)
    tok = jnp.concatenate([jnp.mean(xs, axis=1, keepdims=True), xs], axis=1)
    tok = tok + params['pos'][None]
    q = tok @ params['w_q'] + params['b_q'][0]
    k = tok @ params['w_k'] + params['b_k'][0]
    v = tok @ params['w_v'] + params['b_v'][0]
    q = q.reshape(N, L, num_heads, hd).transpose(0, 2, 1, 3) * (1.0 / math.sqrt(hd))
    k = k.reshape(N, L, num_heads, hd).transpose(0, 2, 1, 3)
    v = v.reshape(N, L, num_heads, hd).transpose(0, 2, 1, 3)
    s = jnp.einsum('nhqd,nhkd->nhqk', q, k)
    p = jax.nn.softmax(s, axis=-1)
    o = jnp.einsum('nhqk,nhkd->nhqd', p, v).transpose(0, 2, 1, 3).reshape(N, L, C)
    out = o @ params['w_c'] + params['b_c'][0]
    return out[:, 0]          # == PyTorch `x[0]` in (L, N, Dout) layout


# ----------------------------------------------------------------------------
# Deterministic parameter init (shapes from AttentionPool2d.__init__)
# ----------------------------------------------------------------------------
def init_attention_pool_params(key, spacial_dim, embed_dim, output_dim=None):
    out_dim = output_dim or embed_dim
    L = spacial_dim ** 2 + 1
    ks = jax.random.split(key, 9)

    def w_init(k, fan_in, fan_out):
        w = jax.random.normal(k, (fan_in, fan_out), jnp.float32) * (fan_in ** -0.5)
        # pre-round to bf16-representable values (stored f32) so the kernel's
        # bf16 weight cast is exact and the reference uses identical weights.
        return w.astype(jnp.bfloat16).astype(jnp.float32)

    def b_init(k, fan_in, n):
        return jax.random.normal(k, (1, n), jnp.float32) * (fan_in ** -0.5)

    return {
        'pos': jax.random.normal(ks[0], (L, embed_dim), jnp.float32) * (embed_dim ** -0.5),
        # Linear weights stored pre-transposed: y = x @ w + b
        'w_q': w_init(ks[1], embed_dim, embed_dim), 'b_q': b_init(ks[2], embed_dim, embed_dim),
        'w_k': w_init(ks[3], embed_dim, embed_dim), 'b_k': b_init(ks[4], embed_dim, embed_dim),
        'w_v': w_init(ks[5], embed_dim, embed_dim), 'b_v': b_init(ks[6], embed_dim, embed_dim),
        'w_c': w_init(ks[7], embed_dim, out_dim),   'b_c': b_init(ks[8], embed_dim, out_dim),
    }


if __name__ == "__main__":
    # Small config: AttentionPool2d(spacial_dim=4, embed_dim=32, num_heads=4, output_dim=64)
    spacial_dim, embed_dim, num_heads, output_dim = 4, 32, 4, 64
    batch = 2

    key = jax.random.PRNGKey(0)
    kx, kp = jax.random.split(key)
    x = jax.random.normal(kx, (batch, embed_dim, spacial_dim, spacial_dim), jnp.float32)
    params = init_attention_pool_params(kp, spacial_dim, embed_dim, output_dim)

    out = attention_pool2d_pallas(x, params, num_heads)
    out = jax.block_until_ready(out)

    ref = attention_pool2d_ref(x, params, num_heads)
    ref = jax.block_until_ready(ref)

    assert out.shape == (batch, output_dim), out.shape
    max_err = float(jnp.max(jnp.abs(out - ref)))
    # tolerance accounts for bf16 tokens / matmul inputs (f32 accumulation)
    assert max_err < 5e-2, f"max abs error vs reference: {max_err}"
    print("KERNEL_OK")
</pallas_src>

<mosaic_0001>
module attributes {stable_mosaic.version = 11 : i64} {
  func.func @_k(%arg0: i32, %arg1: memref<8x128xf32, #tpu.memory_space<vmem>>, %arg2: memref<8x128xf32, #tpu.memory_space<vmem>>) attributes {dimension_semantics = [#tpu.dimension_semantics<arbitrary>], iteration_bounds = array<i64: 2>, scalar_prefetch = 0 : i64, scratch_operands = 0 : i64, tpu.core_type = #tpu.core_type<tc>, window_params = [{pipeline_mode = #tpu.pipeline_mode<synchronous>, transform_indices = @transform_0, window_bounds = array<i64: 8, 128>}, {pipeline_mode = #tpu.pipeline_mode<synchronous>, transform_indices = @transform_1, window_bounds = array<i64: 8, 128>}]} {
    %c0 = arith.constant 0 : index
    %c0_0 = arith.constant 0 : index
    %0 = vector.load %arg1[%c0, %c0_0] : memref<8x128xf32, #tpu.memory_space<vmem>>, vector<8x128xf32>
    %c0_1 = arith.constant 0 : index
    %c0_2 = arith.constant 0 : index
    %1 = vector.load %arg2[%c0_1, %c0_2] : memref<8x128xf32, #tpu.memory_space<vmem>>, vector<8x128xf32>
    tpu.vector_store %arg2[%c0_1, %c0_2], %0 {strides = array<i32>} : memref<8x128xf32, #tpu.memory_space<vmem>>, vector<8x128xf32>,
    return
  }
  func.func @transform_0(%arg0: i32) -> (i32, i32) {
    %c0_i32 = arith.constant 0 : i32
    %c0_i32_0 = arith.constant 0 : i32
    %c0_i32_1 = arith.constant 0 : i32
    return %c0_i32, %c0_i32_0 : i32, i32
  }
  func.func @transform_1(%arg0: i32) -> (i32, i32) {
    %c0_i32 = arith.constant 0 : i32
    %c0_i32_0 = arith.constant 0 : i32
    %c0_i32_1 = arith.constant 0 : i32
    return %c0_i32, %c0_i32_0 : i32, i32
  }
}

module attributes {stable_mosaic.version = 11 : i64} {
  func.func @_attn_pool_kernel(%arg0: i32, %arg1: memref<48x32xbf16, #tpu.memory_space<vmem>>, %arg2: memref<2x32xbf16, #tpu.memory_space<vmem>>, %arg3: memref<32x32xbf16, #tpu.memory_space<vmem>>, %arg4: memref<1x32xf32, #tpu.memory_space<vmem>>, %arg5: memref<32x64xbf16, #tpu.memory_space<vmem>>, %arg6: memref<1x64xf32, #tpu.memory_space<vmem>>, %arg7: memref<32x64xbf16, #tpu.memory_space<vmem>>, %arg8: memref<1x64xf32, #tpu.memory_space<vmem>>, %arg9: memref<2x64xf32, #tpu.memory_space<vmem>>) attributes {dimension_semantics = [#tpu.dimension_semantics<parallel>], iteration_bounds = array<i64: 1>, scalar_prefetch = 0 : i64, scratch_operands = 0 : i64, tpu.core_type = #tpu.core_type<tc>, window_params = [{transform_indices = @transform_0, window_bounds = array<i64: 48, 32>}, {transform_indices = @transform_1, window_bounds = array<i64: 2, 32>}, {pipeline_mode = #tpu.pipeline_mode<synchronous>, transform_indices = @transform_2, window_bounds = array<i64: 32, 32>}, {pipeline_mode = #tpu.pipeline_mode<synchronous>, transform_indices = @transform_3, window_bounds = array<i64: 1, 32>}, {pipeline_mode = #tpu.pipeline_mode<synchronous>, transform_indices = @transform_4, window_bounds = array<i64: 32, 64>}, {pipeline_mode = #tpu.pipeline_mode<synchronous>, transform_indices = @transform_5, window_bounds = array<i64: 1, 64>}, {pipeline_mode = #tpu.pipeline_mode<synchronous>, transform_indices = @transform_6, window_bounds = array<i64: 32, 64>}, {pipeline_mode = #tpu.pipeline_mode<synchronous>, transform_indices = @transform_7, window_bounds = array<i64: 1, 64>}, {transform_indices = @transform_8, window_bounds = array<i64: 2, 64>}]} {
    %c0 = arith.constant 0 : index
    %c0_0 = arith.constant 0 : index
    %0 = vector.load %arg1[%c0, %c0_0] : memref<48x32xbf16, #tpu.memory_space<vmem>>, vector<48x32xbf16>
    %c0_1 = arith.constant 0 : index
    %c0_2 = arith.constant 0 : index
    %1 = vector.load %arg2[%c0_1, %c0_2] : memref<2x32xbf16, #tpu.memory_space<vmem>>, vector<2x32xbf16>
    %c0_3 = arith.constant 0 : index
    %c0_4 = arith.constant 0 : index
    %2 = vector.load %arg5[%c0_3, %c0_4] : memref<32x64xbf16, #tpu.memory_space<vmem>>, vector<32x64xbf16>
    %cst = arith.constant dense<0.000000e+00> : vector<48x64xf32>
    %3 = tpu.matmul %0, %2, %cst {dimension_numbers = #tpu.dot_dimension_numbers<[1], [0], [0], [1], [0, 0, 1, 1], [], []>} : vector<48x32xbf16>, vector<32x64xbf16>, vector<48x64xf32> -> vector<48x64xf32>
    %c0_5 = arith.constant 0 : index
    %c0_6 = arith.constant 0 : index
    %4 = vector.load %arg6[%c0_5, %c0_6] : memref<1x64xf32, #tpu.memory_space<vmem>>, vector<1x64xf32>
    %5 = vector.broadcast %4 : vector<1x64xf32> to vector<48x64xf32>
    %6 = arith.addf %3, %5 : vector<48x64xf32>
    %7 = vector.extract_strided_slice %6 {offsets = [0, 0], sizes = [48, 32], strides = [1, 1]} : vector<48x64xf32> to vector<48x32xf32>
    %8 = vector.extract_strided_slice %6 {offsets = [0, 32], sizes = [48, 32], strides = [1, 1]} : vector<48x64xf32> to vector<48x32xf32>
    %c0_7 = arith.constant 0 : index
    %c0_8 = arith.constant 0 : index
    %9 = vector.load %arg3[%c0_7, %c0_8] : memref<32x32xbf16, #tpu.memory_space<vmem>>, vector<32x32xbf16>
    %cst_9 = arith.constant dense<0.000000e+00> : vector<2x32xf32>
    %10 = tpu.matmul %1, %9, %cst_9 {dimension_numbers = #tpu.dot_dimension_numbers<[1], [0], [0], [1], [0, 0, 1, 1], [], []>} : vector<2x32xbf16>, vector<32x32xbf16>, vector<2x32xf32> -> vector<2x32xf32>
    %c0_10 = arith.constant 0 : index
    %c0_11 = arith.constant 0 : index
    %11 = vector.load %arg4[%c0_10, %c0_11] : memref<1x32xf32, #tpu.memory_space<vmem>>, vector<1x32xf32>
    %12 = vector.broadcast %11 : vector<1x32xf32> to vector<2x32xf32>
    %13 = arith.addf %10, %12 : vector<2x32xf32>
    %cst_12 = arith.constant 0.353553385 : f32
    %14 = vector.broadcast %cst_12 : f32 to vector<2x32xf32>
    %15 = arith.mulf %13, %14 : vector<2x32xf32>
    %16 = tpu.iota {dimensions = array<i32: 1>} : vector<4x32xi32>
    %17 = tpu.iota {dimensions = array<i32: 0>} : vector<4x32xi32>
    %c8_i32 = arith.constant 8 : i32
    %18 = vector.broadcast %c8_i32 : i32 to vector<4x32xi32>
    %19 = arith.muli %17, %18 : vector<4x32xi32>
    %20 = arith.cmpi sge, %16, %19 : vector<4x32xi32>
    %c8_i32_13 = arith.constant 8 : i32
    %21 = vector.broadcast %c8_i32_13 : i32 to vector<4x32xi32>
    %22 = arith.addi %19, %21 : vector<4x32xi32>
    %23 = arith.cmpi slt, %16, %22 : vector<4x32xi32>
    %24 = arith.andi %20, %23 : vector<4x32xi1>
    %25 = arith.extui %24 : vector<4x32xi1> to vector<4x32xi32>
    %26 = arith.sitofp %25 : vector<4x32xi32> to vector<4x32xf32>
    %27 = vector.shape_cast %26 : vector<4x32xf32> to vector<1x4x32xf32>
    %28 = vector.shape_cast %15 : vector<2x32xf32> to vector<2x1x32xf32>
    %29 = vector.broadcast %27 : vector<1x4x32xf32> to vector<2x4x32xf32>
    %30 = vector.broadcast %28 : vector<2x1x32xf32> to vector<2x4x32xf32>
    %31 = arith.mulf %29, %30 : vector<2x4x32xf32>
    %32 = arith.truncf %31 : vector<2x4x32xf32> to vector<2x4x32xbf16>
    %33 = vector.shape_cast %7 : vector<48x32xf32> to vector<2x24x32xf32>
    %34 = arith.truncf %33 : vector<2x24x32xf32> to vector<2x24x32xbf16>
    %35 = vector.shape_cast %8 : vector<48x32xf32> to vector<2x24x32xf32>
    %36 = arith.truncf %35 : vector<2x24x32xf32> to vector<2x24x32xbf16>
    "tpu.trace_start"() <{level = 10 : i32, message = "blc,bhc->blh"}> : () -> ()
    %cst_14 = arith.constant dense<0.000000e+00> : vector<2x24x4xf32>
    %37 = tpu.matmul %34, %32, %cst_14 {dimension_numbers = #tpu.dot_dimension_numbers<[2], [2], [1], [1], [0, 0, 0, 1, 1, 1], [0], [0]>} : vector<2x24x32xbf16>, vector<2x4x32xbf16>, vector<2x24x4xf32> -> vector<2x24x4xf32>
    "tpu.trace_stop"() : () -> ()
    %38 = tpu.iota {dimensions = array<i32: 1>} : vector<2x24x4xi32>
    %c17_i32 = arith.constant 17 : i32
    %39 = vector.broadcast %c17_i32 : i32 to vector<2x24x4xi32>
    %40 = arith.cmpi slt, %38, %39 : vector<2x24x4xi32>
    %cst_15 = arith.constant -1.000000e+30 : f32
    %41 = vector.broadcast %cst_15 : f32 to vector<2x24x4xf32>
    %42 = arith.select %40, %37, %41 : vector<2x24x4xi1>, vector<2x24x4xf32>
    %cst_16 = arith.constant dense<0xFF800000> : vector<2x4xf32>
    %43 = vector.multi_reduction <maximumf>, %42, %cst_16 [1] : vector<2x24x4xf32> to vector<2x4xf32>
    %44 = vector.shape_cast %43 : vector<2x4xf32> to vector<2x1x4xf32>
    %45 = vector.broadcast %44 : vector<2x1x4xf32> to vector<2x24x4xf32>
    %46 = arith.subf %42, %45 : vector<2x24x4xf32>
    %47 = math.exp %46 : vector<2x24x4xf32>
    %cst_17 = arith.constant dense<0.000000e+00> : vector<2x4xf32>
    %48 = vector.multi_reduction <add>, %47, %cst_17 [1] : vector<2x24x4xf32> to vector<2x4xf32>
    %49 = vector.shape_cast %48 : vector<2x4xf32> to vector<2x1x4xf32>
    %50 = vector.broadcast %49 : vector<2x1x4xf32> to vector<2x24x4xf32>
    %51 = arith.divf %47, %50 : vector<2x24x4xf32>
    %52 = arith.truncf %51 : vector<2x24x4xf32> to vector<2x24x4xbf16>
    "tpu.trace_start"() <{level = 10 : i32, message = "blh,blc->bhc"}> : () -> ()
    %cst_18 = arith.constant dense<0.000000e+00> : vector<2x4x32xf32>
    %53 = tpu.matmul %52, %36, %cst_18 {dimension_numbers = #tpu.dot_dimension_numbers<[1], [1], [2], [2], [0, 0, 0, 2, 1, 2], [0], [0]>} : vector<2x24x4xbf16>, vector<2x24x32xbf16>, vector<2x4x32xf32> -> vector<2x4x32xf32>
    "tpu.trace_stop"() : () -> ()
    %54 = vector.shape_cast %26 : vector<4x32xf32> to vector<1x4x32xf32>
    %55 = vector.broadcast %54 : vector<1x4x32xf32> to vector<2x4x32xf32>
    %56 = arith.mulf %55, %53 : vector<2x4x32xf32>
    %cst_19 = arith.constant dense<0.000000e+00> : vector<2x32xf32>
    %57 = vector.multi_reduction <add>, %56, %cst_19 [1] : vector<2x4x32xf32> to vector<2x32xf32>
    %58 = arith.truncf %57 : vector<2x32xf32> to vector<2x32xbf16>
    %c0_20 = arith.constant 0 : index
    %c0_21 = arith.constant 0 : index
    %59 = vector.load %arg7[%c0_20, %c0_21] : memref<32x64xbf16, #tpu.memory_space<vmem>>, vector<32x64xbf16>
    %cst_22 = arith.constant dense<0.000000e+00> : vector<2x64xf32>
    %60 = tpu.matmul %58, %59, %cst_22 {dimension_numbers = #tpu.dot_dimension_numbers<[1], [0], [0], [1], [0, 0, 1, 1], [], []>} : vector<2x32xbf16>, vector<32x64xbf16>, vector<2x64xf32> -> vector<2x64xf32>
    %c0_23 = arith.constant 0 : index
    %c0_24 = arith.constant 0 : index
    %61 = vector.load %arg8[%c0_23, %c0_24] : memref<1x64xf32, #tpu.memory_space<vmem>>, vector<1x64xf32>
    %62 = vector.broadcast %61 : vector<1x64xf32> to vector<2x64xf32>
    %63 = arith.addf %60, %62 : vector<2x64xf32>
    %c0_25 = arith.constant 0 : index
    %c0_26 = arith.constant 0 : index
    %64 = vector.load %arg9[%c0_25, %c0_26] : memref<2x64xf32, #tpu.memory_space<vmem>>, vector<2x64xf32>
    tpu.vector_store %arg9[%c0_25, %c0_26], %63 {strides = array<i32>} : memref<2x64xf32, #tpu.memory_space<vmem>>, vector<2x64xf32>,
    return
  }
  func.func @transform_0(%arg0: i32) -> (i32, i32) {
    %c0_i32 = arith.constant 0 : i32
    %c0_i32_0 = arith.constant 0 : i32
    return %arg0, %c0_i32 : i32, i32
  }
  func.func @transform_1(%arg0: i32) -> (i32, i32) {
    %c0_i32 = arith.constant 0 : i32
    %c0_i32_0 = arith.constant 0 : i32
    return %arg0, %c0_i32 : i32, i32
  }
  func.func @transform_2(%arg0: i32) -> (i32, i32) {
    %c0_i32 = arith.constant 0 : i32
    %c0_i32_0 = arith.constant 0 : i32
    %c0_i32_1 = arith.constant 0 : i32
    return %c0_i32, %c0_i32_0 : i32, i32
  }
  func.func @transform_3(%arg0: i32) -> (i32, i32) {
    %c0_i32 = arith.constant 0 : i32
    %c0_i32_0 = arith.constant 0 : i32
    %c0_i32_1 = arith.constant 0 : i32
    return %c0_i32, %c0_i32_0 : i32, i32
  }
  func.func @transform_4(%arg0: i32) -> (i32, i32) {
    %c0_i32 = arith.constant 0 : i32
    %c0_i32_0 = arith.constant 0 : i32
    %c0_i32_1 = arith.constant 0 : i32
    return %c0_i32, %c0_i32_0 : i32, i32
  }
  func.func @transform_5(%arg0: i32) -> (i32, i32) {
    %c0_i32 = arith.constant 0 : i32
    %c0_i32_0 = arith.constant 0 : i32
    %c0_i32_1 = arith.constant 0 : i32
    return %c0_i32, %c0_i32_0 : i32, i32
  }
  func.func @transform_6(%arg0: i32) -> (i32, i32) {
    %c0_i32 = arith.constant 0 : i32
    %c0_i32_0 = arith.constant 0 : i32
    %c0_i32_1 = arith.constant 0 : i32
    return %c0_i32, %c0_i32_0 : i32, i32
  }
  func.func @transform_7(%arg0: i32) -> (i32, i32) {
    %c0_i32 = arith.constant 0 : i32
    %c0_i32_0 = arith.constant 0 : i32
    %c0_i32_1 = arith.constant 0 : i32
    return %c0_i32, %c0_i32_0 : i32, i32
  }
  func.func @transform_8(%arg0: i32) -> (i32, i32) {
    %c0_i32 = arith.constant 0 : i32
    %c0_i32_0 = arith.constant 0 : i32
    return %arg0, %c0_i32 : i32, i32
  }
}

</mosaic_0001>

<bundles_post_ra>
// kernel: tpu_custom_call.1
= control target key start
LH: loop header
LB: loop body
LE: loop exit
PB: predicated region body
PF: predicated region fallthrough
CT: control target
= control target key end

     0   :  { %6 = vsyncpa [#allocation3], 0  ;;  %s340_s0 = inlined_call_operand.hbm [shape: f32[8,128], index: 0, kind: input, shape index: {}]   ;;  %s341_s1 = inlined_call_operand.hbm [shape: f32[8,128], index: 1, kind: output, shape index: {}]  }
   0x1   :  { %7 = vsyncpa [#allocation4], 0  ;;  %s261_s6 = smov 0  }
   0x2 LB: > { %s144_s7 = sadd.s32 4294967295, %s247_s6   ;;  %p145_p0 = scmp.ge.s32.totalorder %s247_s6, 1  ;;  %s247_s6 = sphi %s261_s6, %s13_s6  }
   0x3   : > { %p60_p1 = scmp.lt.s32.totalorder %s247_s6, 3  ;;  %p275_p3 = scmp.eq.s32.totalorder %s144_s7, 0 }
   0x4   : > { %s249_s10 = smov [#allocation2]   ;;  %s179_s15 = scalar_lea.hbm %s340_s0, 128 }
   0x5   : > { %p269_p2 = pnand %p145_p0, %p60_p1  ;;  %s73_s11 = sshll.u32 %s249_s10, 4  ;;  %s74_s11 = int_to_ptr.vmem [resolvable:$true] %s73_s11 }
   0x6   : > { %s346_s9 = scalar_select %p275_p3, 1, 0 }
   0x7   : > { %s345_s8 = scalar_select %p269_p2, 1, 0 }
   0x8   : > { %p161_p4 = pneg %p269_p2  ;;  %p180_p6 = scmp.ne.s32.totalorder %s340_s0, %s179_s15 }
   0x9   : > { %p186_p10 = scmp.lt.u32.totalorder %s179_s15, %s340_s0 }
   0xa   : > { %p283_p5 = pnand %p275_p3, %p161_p4 }
   0xc   : > { %p181_p7 = pneg %p283_p5 }
   0xe   : > { %p182_p8 = pnand %p181_p7, %p180_p6 }
  0x10   : > { %p183_p9 = pneg %p182_p8 }
  0x12   : > { %p188_p11 = pnand %p186_p10, %p183_p9 }
  0x14   : > { %191 = shalt.err (!%p188_p11)
}
  0x15   : > { %s192_s20 = scalar_lea.vmem %s74_s11, 128  ;;  %p200_p1 = scmp.lt.s32.totalorder %s74_s11, %s74_s11 }
  0x16   : > { %p193_p12 = scmp.ne.s32.totalorder %s74_s11, %s192_s20  ;;  %p201_p4 = scmp.lt.s32.totalorder %s192_s20, %s192_s20 }
  0x18   : > { %p195_p13 = pnand %p193_p12, %p181_p7  ;;  %p202_p3 = por %p201_p4, %p200_p1 }
  0x1a   : > { %p196_p0 = pneg %p195_p13 }
  0x1c   : > { %p203_p2 = pnand %p202_p3, %p196_p0 }
  0x1e   : > { %206 = shalt.err (!%p203_p2)
}
  0x1f   : > { %164 = dma.hbm_to_vmem [thread:$0]  (!%p283_p5), %s340_s0, 128, %s74_s11, [#allocation3]  }
  0x20   : > { %p348_p6 = scmp.ne.s32.totalorder %s345_s8, 0 }
  0x21   : > { %p349_p8 = scmp.ne.s32.totalorder (!%p348_p6), %s346_s9, 0 }
  0x22   : > { %86 = sbr.rel (%p348_p6) target bundleno = 67 (0x43), region = 24 }
  0x29   : > { %238 = dma.done.wait (%p349_p8), [#allocation3], 128  }
  0x2a   : > { %240 = vsyncadd (%p349_p8), [#allocation3], 4294967168  ;;  %s250_s23 = smov [#allocation5]   ;;  %p311_p2 = scmp.eq.s32.totalorder %s144_s7, 1  ;;  %v96_v0 = vld [vmem:[#allocation2] sm:$0xff] }
  0x2b   : > { %s105_s24 = sshll.u32 %s250_s23, 4  ;;  %97 = vst [vmem:[#allocation5] sm:$0xff] %v96_v0  ;;  %s106_s24 = int_to_ptr.vmem [resolvable:$true] %s105_s24 }
  0x2c   : > { %s207_s26 = scalar_lea.vmem %s106_s24, 128  ;;  %p214_p9 = scmp.lt.s32.totalorder %s106_s24, %s106_s24 }
  0x2d   : > { %p208_p3 = scmp.ne.s32.totalorder %s106_s24, %s207_s26  ;;  %p215_p10 = scmp.lt.s32.totalorder %s207_s26, %s207_s26 }
  0x2f   : > { %p209_p5 = pnand %p208_p3, %p311_p2  ;;  %p216_p11 = por %p215_p10, %p214_p9 }
  0x31   : > { %p210_p7 = pneg %p209_p5 }
  0x33   : > { %p217_p12 = pnand %p216_p11, %p210_p7 }
  0x35   : > { %220 = shalt.err (!%p217_p12)
}
  0x36   : > { %s221_s29 = scalar_lea.hbm %s341_s1, 128 }
  0x37   : > { %p222_p13 = scmp.ne.s32.totalorder %s341_s1, %s221_s29  ;;  %p227_p4 = scmp.lt.u32.totalorder %s221_s29, %s341_s1 }
  0x39   : > { %p223_p0 = pnand %p222_p13, %p311_p2 }
  0x3b   : > { %p224_p1 = pneg %p223_p0 }
  0x3d   : > { %p229_p6 = pnand %p227_p4, %p224_p1 }
  0x3f   : > { %232 = shalt.err (!%p229_p6)
}
  0x40   : > { %158 = dma.vmem_to_hbm [thread:$0]  (%p311_p2), %s106_s24, 128, %s341_s1, [#allocation4]  }
  0x41   : > { %242 = dma.done.wait (%p311_p2), [#allocation4], 128  }
  0x42   : > { %244 = vsyncadd (%p311_p2), [#allocation4], 4294967168 }
  0x43 PF: > { %s13_s6 = sadd.s32 1, %s247_s6  }
  0x44   : > { %p10_p8 = scmp.ge.s32.totalorder %s13_s6, 4  }
  0x46   :  { %12 = sbr.rel (!%p10_p8) target bundleno = 2 (0x2), region = 53 }
  0x4d   :  { %118 = vsyncpa [#allocation3], 1 }
  0x4e   :  { %120 = vsyncpa [#allocation3 + $0x1], 1 }
  0x4f   :  { %121 = vsyncpa [#allocation4], 1 }
  0x50   :  { %123 = vsyncpa [#allocation4 + $0x1], 1 }

// kernel: tpu_custom_call.1
= control target key start
LH: loop header
LB: loop body
LE: loop exit
PB: predicated region body
PF: predicated region fallthrough
CT: control target
= control target key end

     0   :  { %v874_v1 = vmov 0.0   ;;  %vm875_vm0 = vmmov 0   ;;  %vm76_vm1 = vcmask 261120   ;;  %s1041_s0 = inlined_call_operand.vmem [shape: bf16[48,32], index: 0, kind: input, shape index: {}]   ;;  %s1042_s1 = inlined_call_operand.vmem [shape: bf16[2,32], index: 1, kind: input, shape index: {}]   ;;  %s1043_s2 = inlined_call_operand.vmem [shape: bf16[32,32], index: 2, kind: input, shape index: {}]   ;;  %s1044_s3 = inlined_call_operand.vmem [shape: f32[1,32], index: 3, kind: input, shape index: {}]   ;;  %s1045_s4 = inlined_call_operand.vmem [shape: bf16[32,64], index: 4, kind: input, shape index: {}]   ;;  %s1046_s5 = inlined_call_operand.vmem [shape: f32[1,64], index: 5, kind: input, shape index: {}]   ;;  %s1047_s6 = inlined_call_operand.vmem [shape: bf16[32,64], index: 6, kind: input, shape index: {}]   ;;  %s1048_s7 = inlined_call_operand.vmem [shape: f32[1,64], index: 7, kind: input, shape index: {}]   ;;  %s1049_s8 = inlined_call_operand.hbm [shape: f32[2,64], index: 8, kind: output, shape index: {}]  }
   0x1   :  { %v825_v0 = vld [vmem:[%s1043_s2] sm:$0xff]   ;;  %773 = vmatprep.subr.bf16.mxu1 %v874_v1  ;;  %757 = vmatprep.subr.bf16.mxu0 %v874_v1  ;;  %v827_v3 = vld [vmem:[%s1043_s2 + $0x8] sm:$0xff]  }
   0x2   :  { %v826_v2 = vld [vmem:[%s1045_s4] sm:$0xff]   ;;  %774 = vmatpush3.bf16.msra.mxu1 %v825_v0  ;;  %777 = vmatprep.mubr.msk.bf16.mxu1 %vm875_vm0, %v874_v1  ;;  %v828_v4 = vld [vmem:[%s1045_s4 + $0x8] sm:$0xff]  }
   0x3   :  { %758 = vmatpush3.bf16.msra.mxu0 %v826_v2  ;;  %775 = vmatprep.subr.bf16.mxu1 %v874_v1  ;;  %v37_v5 = vld [vmem:[%s1042_s1] sm:$0x1] }
   0x4   :  { %759 = vmatprep.subr.bf16.mxu0 %v874_v1  ;;  %761 = vmatprep.mubr.msk.bf16.mxu0 %vm875_vm0, %v874_v1  ;;  %v829_v6 = vld [vmem:[%s1041_s0] sm:$0xff]  }
   0x6   :  { %776 = vmatpush3.bf16.msra.mxu1 %v827_v3 }
   0x7   :  { %760 = vmatpush3.bf16.msra.mxu0 %v828_v4 }
   0x8   :  { %793 = vmatprep.subr.bf16.mxu0 %v874_v1 }
   0x9   :  { %778 = vmatmul.mubr.msk.bf16.vlgmr.msra.gmra.mrb[0].mxu1 %vm76_vm1, %v37_v5 }
   0xa   :  { %13 = vsyncpa [#allocation3], 0  ;;  %762 = vmatmul.mubr.msk.bf16.vlgmr.msra.gmra.mrb[0].mxu0 %vm76_vm1, %v829_v6  ;;  %v830_v7 = vld [vmem:[%s1041_s0 + $0x8] sm:$0xff]   ;;  %v831_v8 = vld [vmem:[%s1041_s0 + $0x10] sm:$0xff]   ;;  %v210_v9 = vlaneseq  ;;  %v876_v11 = vmov 1966171168  }
   0xb   :  { %765 = vmatprep.mubr.msk.bf16.mxu0 %vm875_vm0, %v874_v1  ;;  %v223_v12 = vunpack.c.l.s4 %v876_v11  ;;  %v719_v15 = vld [vmem:[%s1044_s3] ss:$0 sm:$0xff]  ;;  %s877_s3 = smov 96   ;;  %vm489_vm5 = vcmask 1043456   ;;  %vm387_vm7 = vcmask 31744   ;;  %vm485_vm8 = vcmask 195584  }
   0xc   :  { %v967_v10 = vshrl.u32 %v210_v9, 7  ;;  %v211_v16 = vand.u32 127, %v210_v9  ;;  %v710_v18 = vld [vmem:[%s1046_s5] ss:$0 sm:$0xff]  ;;  %vm604_vm9 = vcmask 257024   ;;  %vm636_vm10 = vcmask 1041409  }
   0xd   :  { %v224_v14 = vunpack.c.0.s8 %v223_v12  ;;  %s878_s25 = smov [#allocation2]   ;;  %vm694_vm11 = vcmask 517120  }
   0xe   :  { %v214_v13 = vmul.u32 8, %v967_v10  ;;  %v246_v33 = vsub.s32 0, %v967_v10  ;;  %v377_v5 = vadd.s32 16, %v967_v10  ;;  %s702_s26 = sshll.u32 %s878_s25, 4  ;;  %s703_s26 = int_to_ptr.vmem [resolvable:$true] %s702_s26 }
   0xf   :  { %v227_v21 = vsub.s32 %v224_v14, %v967_v10  ;;  %s850_s27 = scalar_lea.vmem %s703_s26, 32  ;;  %p855_p1 = scmp.lt.s32.totalorder %s703_s26, %s703_s26 }
  0x10   :  { %v216_v17 = vadd.s32 8, %v214_v13  ;;  %vm215_vm2 = vcmp.ge.s32.totalorder %v211_v16, %v214_v13  ;;  %vm380_vm6 = vcmp.lt.s32.totalorder %v377_v5, 17  ;;  %p851_p0 = scmp.ne.s32.totalorder %s703_s26, %s850_s27  ;;  %p856_p2 = scmp.lt.s32.totalorder %s850_s27, %s850_s27 }
  0x12   :  { %766 = vmatmul.mubr.msk.bf16.gmra.mrb[4].mxu0 %vm76_vm1, %v830_v7  ;;  %vm217_vm3 = vcmp.lt.s32.totalorder %v211_v16, %v216_v17  ;;  %p857_p3 = por %p856_p2, %p855_p1 }
  0x13   :  { %769 = vmatprep.mubr.msk.bf16.mxu0 %vm875_vm0, %v874_v1  ;;  %vm218_vm4 = vmand %vm215_vm2, %vm217_vm3 }
  0x14   :  { %v981_v37 = vsel %vm218_vm4, 1.0, %v874_v1  ;;  %p858_p4 = pnand %p857_p3, %p851_p0 }
  0x1a   :  { %770 = vmatmul.mubr.msk.bf16.gmra.mrb[8].mxu0 %vm76_vm1, %v831_v8 }
  0x1b   :  { %797 = vmatprep.mubr.msk.bf16.mxu0 %vm875_vm0, %v874_v1 }
  0xdc   :  { %v203_v19 = vpop.f32.mrb[0].mxu1 }
  0xdd   :  { %v204_v20 = vadd.f32 %v719_v15, %v203_v19  ;;  %v779_v22 = vpop.f32.mrb[1].mxu1  ;;  %v120_v23 = vpop.f32.mrb[0].mxu0 }
  0xde   :  { %v206_v24 = vpop.f32.mrb[2].mxu1  ;;  %v121_v25 = vadd.f32 %v710_v18, %v120_v23  ;;  %v763_v26 = vpop.f32.mrb[1].mxu0 }
  0xdf   :  { %v209_v27 = vmul.f32 0.35355338, %v204_v20  ;;  %v780_v28 = vpop.f32.mrb[3].mxu1  ;;  %v123_v29 = vpop.f32.mrb[2].mxu0 }
  0xe0   :  { %v124_v30 = vadd.f32 %v710_v18, %v123_v29  ;;  %v764_v31 = vpop.f32.mrb[3].mxu0 }
  0xe1   :  { %v228_v32 = vrot.slane %v209_v27, %v227_v21 }
  0xe2   :  { %v258_v34 = vpack.c.bf16 %v124_v30, %v121_v25 }
  0xe3   :  { %v229_v35 = vcombine.high %v228_v32, %v228_v32  ;;  %v236_v36 = vrot.slane %v228_v32, %v227_v21 }
  0xe4   :  { %480 = vrot.lane.b32.xlu0 %v258_v34, %s877_s3  ;;  %783 = vmatprep.mubr.msk.bf16.mxu1 %vm76_vm1, %v258_v34 }
  0xe5   :  { %v243_v38 = vrot.slane %v229_v35, %v227_v21  ;;  %v247_v39 = vrot.slane %v236_v36, %v246_v33  ;;  %v128_v40 = vpop.f32.mrb[4].mxu0 }
  0xe6   :  { %v129_v41 = vadd.f32 %v710_v18, %v128_v40  ;;  %v767_v42 = vpop.f32.mrb[5].mxu0 }
  0xe7   :  { %v251_v43 = vrot.slane %v243_v38, %v246_v33  ;;  %v131_v44 = vpop.f32.mrb[6].mxu0  ;;  %v254_v45 = vmul.f32 %v981_v37, %v247_v39 }
  0xe8   :  { %v259_v46 = vpack.c.bf16 %v129_v41, %v129_v41  ;;  %v768_v47 = vpop.f32.mrb[7].mxu0  ;;  %v132_v52 = vadd.f32 %v710_v18, %v131_v44 }
  0xe9   :  { %v256_v48 = vpack.c.bf16 %v254_v45, %v254_v45  ;;  %v255_v49 = vmul.f32 %v981_v37, %v251_v43 }
  0xea   :  { %482 = vrot.lane.b32.xlu1 %v259_v46, %s877_s3 }
  0xeb   :  { %817 = vmatprep.subr.msk.bf16.mxu1 %vm76_vm1, %v256_v48  ;;  %v269_v50 = vsel %vm76_vm1, %v256_v48, 0  ;;  %v257_v51 = vpack.c.bf16 %v255_v49, %v255_v49 }
  0xec   :  { %782 = vmatpush3.bf16.xpose.msra.mxu1 %v269_v50 }
  0xed   :  { %v136_v53 = vpop.f32.mrb[8].mxu0  ;;  %818 = vmatprep.subr.msk.bf16.mxu1 %vm76_vm1, %v257_v51  ;;  %v326_v61 = vsel %vm76_vm1, %v257_v51, 0 }
  0xee   :  { %v137_v54 = vadd.f32 %v710_v18, %v136_v53  ;;  %v771_v55 = vpop.f32.mrb[9].mxu0 }
  0xef   :  { %v139_v56 = vpop.f32.mrb[10].mxu0 }
  0xf0   :  { %v260_v57 = vpack.c.bf16 %v137_v54, %v132_v52  ;;  %v140_v58 = vadd.f32 %v710_v18, %v139_v56  ;;  %v772_v59 = vpop.f32.mrb[11].mxu0 }
  0xf2   :  { %551 = vrot.lane.b32.xlu0 %v260_v57, %s877_s3  ;;  %v261_v60 = vpack.c.bf16 %v140_v58, %v140_v58 }
  0xf3   :  { %784 = vmatmul.mubr.msk.bf16.vlgmr.msra.gmra.mrb[4].mxu1 %vm76_vm1, %v259_v46 }
  0xf4   :  { %788 = vmatpush3.bf16.xpose.msra.mxu1 %v326_v61  ;;  %789 = vmatprep.mubr.msk.bf16.mxu1 %vm76_vm1, %v260_v57 }
  0xf5   :  { %553 = vrot.lane.b32.xlu1 %v261_v60, %s877_s3  ;;  %801 = vmatprep.subr.bf16.mxu1 %v874_v1 }
  0xfb   :  { %790 = vmatmul.mubr.msk.bf16.vlgmr.msra.gmra.mrb[8].mxu1 %vm76_vm1, %v261_v60 }
  0xfc   :  { %805 = vmatprep.mubr.msk.bf16.mxu1 %vm875_vm0, %v874_v1 }
 0x156   :  { %v481_v62 = vpop.permute.xlu0 %480 }
 0x157   :  { %794 = vmatpush3.bf16.msra.mxu0 %v481_v62 }
 0x158   :  { %795 = vmatprep.subr.bf16.mxu0 %v874_v1 }
 0x15c   :  { %v483_v63 = vpop.permute.xlu1 %482 }
 0x15d   :  { %v491_v0 = vsel %vm489_vm5, %v483_v63, 0 }
 0x15e   :  { %796 = vmatpush3.bf16.msra.mxu0 %v491_v0 }
 0x15f   :  { %809 = vmatprep.subr.bf16.mxu0 %v874_v1 }
 0x164   :  { %v552_v2 = vpop.permute.xlu0 %551 }
 0x165   :  { %802 = vmatpush3.bf16.msra.mxu1 %v552_v2 }
 0x166   :  { %803 = vmatprep.subr.bf16.mxu1 %v874_v1 }
 0x167   :  { %v554_v3 = vpop.permute.xlu1 %553 }
 0x168   :  { %v560_v4 = vsel %vm489_vm5, %v554_v3, 0 }
 0x169   :  { %804 = vmatpush3.bf16.msra.mxu1 %v560_v4 }
 0x1c6   :  { %v785_v6 = vpop.f32.mrb[4].mxu1 }
 0x1c7   :  { %v383_v7 = vsel %vm380_vm6, %v785_v6, -1e+30  ;;  %v305_v8 = vpop.f32.mrb[5].mxu1 }
 0x1c8   :  { %v390_v9 = vsel %vm387_vm7, %v383_v7, -inf  ;;  %v388_v11 = vsel %vm387_vm7, %v305_v8, -inf  ;;  %v786_v12 = vpop.f32.mrb[6].mxu1 }
 0x1c9   :  { %v391_v13 = vmax.f32 %v388_v11, %v390_v9  ;;  %v308_v14 = vpop.f32.mrb[7].mxu1 }
 0x1ca   :  { %v389_v15 = vsel %vm387_vm7, %v308_v14, -inf }
 0x1cb   :  { %v392_v16 = vmax.f32 %v391_v13, %v389_v15 }
 0x1cd   :  { %v393_v17 = vrot.slane %v392_v16, 4 }
 0x1ce   :  { %v791_v18 = vpop.f32.mrb[8].mxu1 }
 0x1cf   :  { %v394_v19 = vmax.f32 %v392_v16, %v393_v17  ;;  %v386_v20 = vsel %vm380_vm6, %v791_v18, -1e+30  ;;  %v362_v10 = vpop.f32.mrb[9].mxu1 }
 0x1d0   :  { %v401_v21 = vsel %vm387_vm7, %v386_v20, -inf  ;;  %v399_v22 = vsel %vm387_vm7, %v362_v10, -inf  ;;  %v792_v23 = vpop.f32.mrb[10].mxu1 }
 0x1d1   :  { %v395_v24 = vrot.slane %v394_v19, 2  ;;  %v402_v25 = vmax.f32 %v399_v22, %v401_v21  ;;  %v365_v26 = vpop.f32.mrb[11].mxu1 }
 0x1d2   :  { %v400_v27 = vsel %vm387_vm7, %v365_v26, -inf }
 0x1d3   :  { %v396_v28 = vmax.f32 %v394_v19, %v395_v24  ;;  %v403_v29 = vmax.f32 %v402_v25, %v400_v27 }
 0x1d5   :  { %v397_v30 = vrot.slane %v396_v28, 1  ;;  %v404_v31 = vrot.slane %v403_v29, 4 }
 0x1d7   :  { %v398_v32 = vmax.f32 %v396_v28, %v397_v30  ;;  %v405_v33 = vmax.f32 %v403_v29, %v404_v31  ;;  %v832_v30 = vld [vmem:[%s1047_s6] sm:$0xff]   ;;  %v833_v31 = vld [vmem:[%s1047_s6 + $0x8] sm:$0xff]  }
 0x1d9   :  { %v410_v34 = vsub.f32 %v305_v8, %v398_v32  ;;  %v411_v35 = vsub.f32 %v308_v14, %v398_v32  ;;  %v412_v36 = vsub.f32 %v383_v7, %v398_v32  ;;  %v406_v38 = vrot.slane %v405_v33, 2 }
 0x1db   :  { %v416_v39 = vmul.f32 1.442695, %v410_v34  ;;  %v418_v40 = vmul.f32 1.442695, %v411_v35  ;;  %v420_v41 = vmul.f32 1.442695, %v412_v36  ;;  %v407_v42 = vmax.f32 %v405_v33, %v406_v38 }
 0x1dd   :  { %834 = vpow2.f32 %v416_v39  ;;  %v408_v43 = vrot.slane %v407_v42, 1 }
 0x1de   :  { %836 = vpow2.f32 %v418_v40 }
 0x1df   :  { %838 = vpow2.f32 %v420_v41  ;;  %v409_v44 = vmax.f32 %v407_v42, %v408_v43 }
 0x1e1   :  { %v413_v45 = vsub.f32 %v362_v10, %v409_v44  ;;  %v414_v46 = vsub.f32 %v365_v26, %v409_v44  ;;  %v415_v47 = vsub.f32 %v386_v20, %v409_v44 }
 0x1e3   :  { %v422_v48 = vmul.f32 1.442695, %v413_v45  ;;  %v424_v49 = vmul.f32 1.442695, %v414_v46  ;;  %v426_v50 = vmul.f32 1.442695, %v415_v47 }
 0x1e5   :  { %840 = vpow2.f32 %v422_v48 }
 0x1e6   :  { %842 = vpow2.f32 %v424_v49 }
 0x1e7   :  { %v835_v51 = vpop.eup %834  ;;  %844 = vpow2.f32 %v426_v50 }
 0x1e8   :  { %v837_v52 = vpop.eup %836  ;;  %v428_v53 = vsel %vm387_vm7, %v835_v51, 0.0 }
 0x1e9   :  { %v839_v54 = vpop.eup %838  ;;  %v429_v55 = vsel %vm387_vm7, %v837_v52, 0.0 }
 0x1ea   :  { %v430_v56 = vadd.f32 %v429_v55, %v428_v53  ;;  %v431_v57 = vsel %vm387_vm7, %v839_v54, 0.0 }
 0x1ec   :  { %v432_v58 = vadd.f32 %v431_v57, %v430_v56 }
 0x1ee   :  { %v433_v59 = vrot.slane %v432_v58, 4 }
 0x1ef   :  { %v841_v60 = vpop.eup %840 }
 0x1f0   :  { %v843_v61 = vpop.eup %842  ;;  %v434_v62 = vadd.f32 %v433_v59, %v432_v58  ;;  %v439_v63 = vsel %vm387_vm7, %v841_v60, 0.0 }
 0x1f1   :  { %v845_v0 = vpop.eup %844  ;;  %v440_v2 = vsel %vm387_vm7, %v843_v61, 0.0 }
 0x1f2   :  { %v435_v3 = vrot.slane %v434_v62, 2  ;;  %v441_v4 = vadd.f32 %v440_v2, %v439_v63  ;;  %v442_v5 = vsel %vm387_vm7, %v845_v0, 0.0 }
 0x1f4   :  { %v436_v6 = vadd.f32 %v435_v3, %v434_v62  ;;  %v443_v7 = vadd.f32 %v442_v5, %v441_v4 }
 0x1f6   :  { %v437_v8 = vrot.slane %v436_v6, 1  ;;  %v444_v9 = vrot.slane %v443_v7, 4 }
 0x1f8   :  { %v438_v11 = vadd.f32 %v437_v8, %v436_v6  ;;  %v445_v12 = vadd.f32 %v444_v9, %v443_v7 }
 0x1fa   :  { %846 = vrcp.f32 %v438_v11  ;;  %v446_v13 = vrot.slane %v445_v12, 2 }
 0x1fc   :  { %v447_v14 = vadd.f32 %v446_v13, %v445_v12 }
 0x1fe   :  { %v448_v15 = vrot.slane %v447_v14, 1 }
 0x200   :  { %v449_v16 = vadd.f32 %v448_v15, %v447_v14 }
 0x202   :  { %848 = vrcp.f32 %v449_v16 }
 0x204   :  { %v847_v17 = vpop.eup %846 }
 0x205   :  { %v451_v18 = vmul.f32 %v847_v17, %v835_v51  ;;  %v452_v19 = vmul.f32 %v847_v17, %v837_v52  ;;  %v453_v20 = vmul.f32 %v847_v17, %v839_v54 }
 0x207   :  { %v458_v10 = vpack.c.bf16 %v452_v19, %v451_v18  ;;  %v459_v21 = vpack.c.bf16 %v453_v20, %v453_v20 }
 0x209   :  { %462 = vxpose.xlu0.c.b16.start [1/2] (short) (narrow) %v458_v10, 16 }
 0x20c   :  { %v849_v22 = vpop.eup %848 }
 0x20d   :  { %463 = vxpose.xlu0.c.b16.end [2/2] (short) (narrow) %v459_v21, 16  ;;  %v455_v23 = vmul.f32 %v849_v22, %v841_v60  ;;  %v456_v24 = vmul.f32 %v849_v22, %v843_v61  ;;  %v457_v25 = vmul.f32 %v849_v22, %v845_v0  ;;  %v730_v61 = vld [vmem:[%s1048_s7] ss:$0 sm:$0xff] }
 0x20f   :  { %v460_v26 = vpack.c.bf16 %v456_v24, %v455_v23  ;;  %v461_v27 = vpack.c.bf16 %v457_v25, %v457_v25 }
 0x211   :  { %533 = vxpose.xlu1.c.b16.start [1/2] (short) (narrow) %v460_v26, 16 }
 0x215   :  { %534 = vxpose.xlu1.c.b16.end [2/2] (short) (narrow) %v461_v27, 16 }
 0x26f   :  { %v470_v28 = vpop.trf.xlu0 }
 0x270   :  { %798 = vmatmul.mubr.msk.bf16.vlgmr.msra.gmra.mrb[12].mxu0 %vm485_vm8, %v470_v28 }
 0x271   :  { %813 = vmatprep.mubr.msk.bf16.mxu0 %vm875_vm0, %v874_v1  ;;  %810 = vmatpush3.bf16.msra.mxu0 %v832_v30 }
 0x272   :  { %811 = vmatprep.subr.bf16.mxu0 %v874_v1 }
 0x275   :  { %812 = vmatpush3.bf16.msra.mxu0 %v833_v31 }
 0x277   :  { %v541_v29 = vpop.trf.xlu1 }
 0x278   :  { %806 = vmatmul.mubr.msk.bf16.vlgmr.msra.gmra.mrb[12].mxu1 %vm485_vm8, %v541_v29 }
 0x343   :  { %v527_v32 = vpop.f32.mrb[12].mxu0 }
 0x344   :  { %v602_v33 = vmul.f32 %v981_v37, %v527_v32  ;;  %v799_v34 = vpop.f32.mrb[13].mxu0 }
 0x345   :  { %v530_v35 = vpop.f32.mrb[14].mxu0 }
 0x346   :  { %v605_v36 = vsel %vm604_vm9, %v602_v33, 0.0  ;;  %v800_v38 = vpop.f32.mrb[15].mxu0 }
 0x347   :  { %v606_v39 = vrot.slane %v605_v36, 4 }
 0x349   :  { %v607_v40 = vadd.f32 %v606_v39, %v605_v36 }
 0x34b   :  { %v608_v41 = vrot.slane %v607_v40, 2  ;;  %v596_v42 = vpop.f32.mrb[12].mxu1 }
 0x34c   :  { %v603_v43 = vmul.f32 %v981_v37, %v596_v42  ;;  %v807_v1 = vpop.f32.mrb[13].mxu1 }
 0x34d   :  { %v609_v44 = vadd.f32 %v608_v41, %v607_v40  ;;  %v599_v45 = vpop.f32.mrb[14].mxu1 }
 0x34e   :  { %v612_v46 = vsel %vm604_vm9, %v603_v43, 0.0  ;;  %v808_v47 = vpop.f32.mrb[15].mxu1 }
 0x34f   :  { %v613_v48 = vrot.slane %v612_v46, 4  ;;  %v610_v49 = vrot.slane %v609_v44, 1 }
 0x351   :  { %v614_v50 = vadd.f32 %v613_v48, %v612_v46  ;;  %v611_v52 = vadd.f32 %v610_v49, %v609_v44 }
 0x353   :  { %v615_v51 = vrot.slane %v614_v50, 2  ;;  %v619_v55 = vpack.c.bf16 %v611_v52, %v611_v52 }
 0x355   :  { %v616_v53 = vadd.f32 %v615_v51, %v614_v50  ;;  %v634_v58 = vunpack.c.l.b16 %v619_v55 }
 0x357   :  { %v617_v54 = vrot.slane %v616_v53, 1 }
 0x359   :  { %v618_v56 = vadd.f32 %v617_v54, %v616_v53 }
 0x35b   :  { %v620_v57 = vpack.c.bf16 %v618_v56, %v618_v56 }
 0x35d   :  { %v635_v59 = vunpack.c.l.b16 %v620_v57 }
 0x35f   :  { %v637_v60 = vsel %vm636_vm10, %v635_v59, %v634_v58 }
 0x360   :  { %v638_v37 = vpack.c.b16 %v637_v60, %v637_v60 }
 0x362   :  { %814 = vmatmul.mubr.msk.bf16.vlgmr.msra.gmra.mrb[16].mxu0 %vm76_vm1, %v638_v37 }
 0x435   :  { %v688_v62 = vpop.f32.mrb[16].mxu0 }
 0x436   :  { %v689_v63 = vadd.f32 %v730_v61, %v688_v62  ;;  %v815_v0 = vpop.f32.mrb[17].mxu0 }
 0x437   :  { %v691_v2 = vpop.f32.mrb[18].mxu0 }
 0x438   :  { %v816_v3 = vpop.f32.mrb[19].mxu0  ;;  %695 = vst.msk [vmem:[#allocation2] sm:$0x3] %vm694_vm11, %v689_v63 }
 0x439   :  { %861 = shalt.err (!%p858_p4)
}
 0x43a   :  { %s862_s7 = scalar_lea.hbm %s1049_s8, 32 }
 0x43b   :  { %p863_p5 = scmp.ne.s32.totalorder %s1049_s8, %s862_s7  ;;  %p866_p6 = scmp.lt.u32.totalorder %s862_s7, %s1049_s8 }
 0x43d   :  { %p868_p7 = pnand %p866_p6, %p863_p5 }
 0x43f   :  { %871 = shalt.err (!%p868_p7)
}
 0x440   :  { %705 = dma.vmem_to_hbm [thread:$0]  %s703_s26, 32, %s1049_s8, [#allocation3]  }
 0x441   :  { %872 = dma.done.wait [#allocation3], 32  }
 0x442   :  { %873 = vsyncadd [#allocation3], 4294967264 }
 0x443   :  { %709 = vsyncpa [#allocation3], 1 }

</bundles_post_ra>
